<compile_context>
chip_gen: v7x
topology: tpu7x:2x2x1
jax: 0.10.0
libtpu: 0.0.40
codegen_flags: <defaults>
</compile_context>

<pallas_src>
import functools

import jax
import jax.numpy as jnp
from jax.experimental import pallas as pl
from jax.experimental.pallas import tpu as pltpu

# CIFAR-10 normalization constants (same as the PyTorch module's globals)
MEAN = [x / 255 for x in [125.3, 123.0, 113.9]]
STD = [x / 255 for x in [63.0, 62.1, 66.7]]


def _vmem_capacity_bytes() -> int:
    try:
        return int(pltpu.get_tpu_info().vmem_capacity_bytes)
    except Exception:
        return 64 << 20  # conservative fallback: v7x per-TensorCore VMEM


def _normalize_kernel(x_ref, scale_ref, bias_ref, o_ref, *, block_rows, num_channels):
    # x_ref / o_ref: (Rb, Lb) dense tile; rows are flattened (n, c) pairs -> channel = row % C
    # scale_ref / bias_ref: (C,) f32 tables resident in SMEM (no per-step DMA, no lane padding)
    row0 = pl.program_id(0) * block_rows
    rows = row0 + jax.lax.broadcasted_iota(jnp.int32, (block_rows, 1), 0)
    ch = rows % num_channels

    scale = jnp.full((block_rows, 1), scale_ref[0], dtype=jnp.float32)
    bias = jnp.full((block_rows, 1), bias_ref[0], dtype=jnp.float32)
    for c in range(1, num_channels):  # C is a small compile-time constant (3 here)
        sel = ch == c
        scale = jnp.where(sel, scale_ref[c], scale)
        bias = jnp.where(sel, bias_ref[c], bias)

    # Single fused multiply-add per element, computed in f32, cast on store.
    y = x_ref[...].astype(jnp.float32) * scale + bias
    o_ref[...] = y.astype(o_ref.dtype)


def normalize_layer(x, mean, std):
    """Pallas equivalent of Normalize_layer.forward: (x - mean[c]) / std[c].

    x:    (N, C, H, W)
    mean: (C,)
    std:  (C,)
    """
    N, C, H, W = x.shape
    HW = H * W
    R = N * C
    dtype = x.dtype
    itemsize = jnp.dtype(dtype).itemsize

    mean_f = jnp.asarray(mean, jnp.float32).reshape(-1)
    std_f = jnp.asarray(std, jnp.float32).reshape(-1)
    assert mean_f.shape[0] == C and std_f.shape[0] == C
    scale_c = 1.0 / std_f        # (C,) f32, lives in SMEM
    bias_c = -mean_f / std_f     # (C,) f32, lives in SMEM

    # Flatten to (N*C, H*W): free metadata reshape for contiguous NCHW.
    x2d = x.reshape(R, HW)

    # ---- block sizing ------------------------------------------------------
    # Sub-32-bit dtypes pack along sublanes: keep row blocks a multiple of the
    # packed sublane count (f32: 8, bf16: 16, int8/fp8: 32).
    row_align = 8 * max(1, 4 // itemsize)

    vmem_cap = _vmem_capacity_bytes()
    # ~5/8 of VMEM for the pipeline; account for double-buffered in+out blocks
    # (+ f32 temps when the input is narrower than f32). Cap a block at 12 MB.
    budget = max(32 << 20, (vmem_cap * 5) // 8)
    per_elem = 4 * itemsize + (0 if itemsize >= 4 else 8)
    max_block_elems = min(budget // per_elem, (12 << 20) // itemsize)

    if row_align * HW > max_block_elems and HW > 128:
        # Huge images: tile the pixel (lane) axis in multiples of 128 so even a
        # minimal row block double-buffers inside VMEM on every generation.
        Rb = row_align
        Lb = max(128, (max_block_elems // row_align) // 128 * 128)
        Lb = int(min(Lb, (HW // 128) * 128))
    else:
        # Common case: lane dim = full H*W (legal even if not a multiple of 128).
        Lb = HW
        rb = max(row_align, (max_block_elems // max(HW, 1)) // row_align * row_align)
        Rb = int(min(rb, pl.cdiv(R, row_align) * row_align))
        # v7x has 2 TensorCores: guarantee >= 2 parallel grid steps when the whole
        # problem would otherwise collapse into a single block.
        if Rb >= R and R >= 2 * row_align:
            Rb = max(row_align, (R // 2) // row_align * row_align)

    grid = (pl.cdiv(R, Rb), pl.cdiv(HW, Lb))

    block_bytes = Rb * Lb * itemsize
    temp_bytes = 0 if itemsize >= 4 else 2 * Rb * Lb * 4
    vmem_limit = int(min(max(4 * block_bytes + temp_bytes + (4 << 20), 16 << 20),
                         vmem_cap - (4 << 20)))

    kernel = functools.partial(_normalize_kernel, block_rows=Rb, num_channels=C)

    out2d = pl.pallas_call(
        kernel,
        out_shape=jax.ShapeDtypeStruct((R, HW), dtype),
        grid_spec=pltpu.PrefetchScalarGridSpec(
            num_scalar_prefetch=0,
            grid=grid,
            in_specs=[
                pl.BlockSpec((Rb, Lb), lambda i, j: (i, j)),
                pl.BlockSpec(memory_space=pltpu.MemorySpace.SMEM),
                pl.BlockSpec(memory_space=pltpu.MemorySpace.SMEM),
            ],
            out_specs=pl.BlockSpec((Rb, Lb), lambda i, j: (i, j)),
        ),
        compiler_params=pltpu.CompilerParams(
            dimension_semantics=("parallel", "parallel"),
            vmem_limit_bytes=vmem_limit,
        ),
        cost_estimate=pl.CostEstimate(
            flops=2 * R * HW,
            transcendentals=0,
            bytes_accessed=2 * R * HW * itemsize + 2 * C * 4,
        ),
    )(x2d, scale_c, bias_c)

    # Free metadata reshape back to NCHW (no padding to strip).
    return out2d.reshape(N, C, H, W)


if __name__ == "__main__":
    key = jax.random.PRNGKey(0)
    N, C, H, W = 2, 3, 16, 16  # C=3 matches the CIFAR mean/std the module is built with
    x = jax.random.uniform(key, (N, C, H, W), dtype=jnp.float32)

    mean = jnp.asarray(MEAN, dtype=jnp.float32)
    std = jnp.asarray(STD, dtype=jnp.float32)

    y = jax.block_until_ready(normalize_layer(x, mean, std))

    # Reference check against plain JAX broadcasting (same semantics as the PyTorch module)
    ref = (x - mean.reshape(1, C, 1, 1)) / std.reshape(1, C, 1, 1)
    assert y.shape == x.shape and y.dtype == x.dtype
    assert jnp.allclose(y, ref, rtol=1e-5, atol=1e-5)

    print("KERNEL_OK")
</pallas_src>

<mosaic_0001>
module attributes {stable_mosaic.version = 11 : i64} {
  func.func @_normalize_kernel(%arg0: i32, %arg1: i32, %arg2: memref<8x256xf32, #tpu.memory_space<vmem>>, %arg3: memref<3xf32, #tpu.memory_space<smem>>, %arg4: memref<3xf32, #tpu.memory_space<smem>>, %arg5: memref<8x256xf32, #tpu.memory_space<vmem>>) attributes {dimension_semantics = [#tpu.dimension_semantics<parallel>, #tpu.dimension_semantics<parallel>], iteration_bounds = array<i64: 1, 1>, scalar_prefetch = 0 : i64, scratch_operands = 0 : i64, tpu.core_type = #tpu.core_type<tc>, window_params = [{transform_indices = @transform_0, window_bounds = array<i64: 8, 256>}, {transform_indices = @transform_1, window_bounds = array<i64: 3>}, {transform_indices = @transform_2, window_bounds = array<i64: 3>}, {transform_indices = @transform_3, window_bounds = array<i64: 8, 256>}]} {
    %c8_i32 = arith.constant 8 : i32
    %0 = arith.muli %arg0, %c8_i32 : i32
    %1 = tpu.iota {dimensions = array<i32: 0>} : vector<8x1xi32>
    %2 = vector.broadcast %0 : i32 to vector<8x1xi32>
    %3 = arith.addi %2, %1 : vector<8x1xi32>
    %c3_i32 = arith.constant 3 : i32
    %c0_i32 = arith.constant 0 : i32
    %4 = arith.cmpi eq, %c3_i32, %c0_i32 : i32
    %c1_i32 = arith.constant 1 : i32
    %5 = arith.select %4, %c1_i32, %c3_i32 : i32
    %6 = vector.broadcast %5 : i32 to vector<8x1xi32>
    %7 = arith.remsi %3, %6 : vector<8x1xi32>
    %c0_i32_0 = arith.constant 0 : i32
    %8 = vector.broadcast %c0_i32_0 : i32 to vector<8x1xi32>
    %9 = arith.cmpi ne, %7, %8 : vector<8x1xi32>
    %c0_i32_1 = arith.constant 0 : i32
    %10 = vector.broadcast %c0_i32_1 : i32 to vector<8x1xi32>
    %11 = arith.cmpi slt, %7, %10 : vector<8x1xi32>
    %c0_i32_2 = arith.constant 0 : i32
    %12 = arith.cmpi slt, %5, %c0_i32_2 : i32
    %13 = vector.broadcast %12 : i1 to vector<8x1xi1>
    %14 = vector.broadcast %13 : vector<8x1xi1> to vector<8x1xi1>
    %15 = arith.xori %11, %14 : vector<8x1xi1>
    %16 = arith.andi %15, %9 : vector<8x1xi1>
    %17 = vector.broadcast %5 : i32 to vector<8x1xi32>
    %18 = arith.addi %7, %17 : vector<8x1xi32>
    %19 = arith.select %16, %18, %7 : vector<8x1xi1>, vector<8x1xi32>
    %c0 = arith.constant 0 : index
    %20 = memref.load %arg3[%c0] : memref<3xf32, #tpu.memory_space<smem>>
    %21 = vector.broadcast %20 : f32 to vector<8x1xf32>
    %c0_3 = arith.constant 0 : index
    %22 = memref.load %arg4[%c0_3] : memref<3xf32, #tpu.memory_space<smem>>
    %23 = vector.broadcast %22 : f32 to vector<8x1xf32>
    %c1_i32_4 = arith.constant 1 : i32
    %24 = vector.broadcast %c1_i32_4 : i32 to vector<8x1xi32>
    %25 = arith.cmpi eq, %19, %24 : vector<8x1xi32>
    %c1 = arith.constant 1 : index
    %26 = memref.load %arg3[%c1] : memref<3xf32, #tpu.memory_space<smem>>
    %27 = vector.broadcast %26 : f32 to vector<8x1xf32>
    %28 = arith.select %25, %27, %21 : vector<8x1xi1>, vector<8x1xf32>
    %c1_5 = arith.constant 1 : index
    %29 = memref.load %arg4[%c1_5] : memref<3xf32, #tpu.memory_space<smem>>
    %30 = vector.broadcast %29 : f32 to vector<8x1xf32>
    %31 = arith.select %25, %30, %23 : vector<8x1xi1>, vector<8x1xf32>
    %c2_i32 = arith.constant 2 : i32
    %32 = vector.broadcast %c2_i32 : i32 to vector<8x1xi32>
    %33 = arith.cmpi eq, %19, %32 : vector<8x1xi32>
    %c2 = arith.constant 2 : index
    %34 = memref.load %arg3[%c2] : memref<3xf32, #tpu.memory_space<smem>>
    %35 = vector.broadcast %34 : f32 to vector<8x1xf32>
    %36 = arith.select %33, %35, %28 : vector<8x1xi1>, vector<8x1xf32>
    %c2_6 = arith.constant 2 : index
    %37 = memref.load %arg4[%c2_6] : memref<3xf32, #tpu.memory_space<smem>>
    %38 = vector.broadcast %37 : f32 to vector<8x1xf32>
    %39 = arith.select %33, %38, %31 : vector<8x1xi1>, vector<8x1xf32>
    %c0_7 = arith.constant 0 : index
    %c0_8 = arith.constant 0 : index
    %40 = vector.load %arg2[%c0_7, %c0_8] : memref<8x256xf32, #tpu.memory_space<vmem>>, vector<8x256xf32>
    %41 = vector.broadcast %36 : vector<8x1xf32> to vector<8x256xf32>
    %42 = arith.mulf %40, %41 : vector<8x256xf32>
    %43 = vector.broadcast %39 : vector<8x1xf32> to vector<8x256xf32>
    %44 = arith.addf %42, %43 : vector<8x256xf32>
    %c0_9 = arith.constant 0 : index
    %c0_10 = arith.constant 0 : index
    %45 = vector.load %arg5[%c0_9, %c0_10] : memref<8x256xf32, #tpu.memory_space<vmem>>, vector<8x256xf32>
    tpu.vector_store %arg5[%c0_9, %c0_10], %44 {strides = array<i32>} : memref<8x256xf32, #tpu.memory_space<vmem>>, vector<8x256xf32>,
    return
  }
  func.func @transform_0(%arg0: i32, %arg1: i32) -> (i32, i32) {
    %c0_i32 = arith.constant 0 : i32
    return %arg0, %arg1 : i32, i32
  }
  func.func @transform_1(%arg0: i32, %arg1: i32) -> i32 {
    %c0_i32 = arith.constant 0 : i32
    %c0_i32_0 = arith.constant 0 : i32
    return %c0_i32 : i32
  }
  func.func @transform_2(%arg0: i32, %arg1: i32) -> i32 {
    %c0_i32 = arith.constant 0 : i32
    %c0_i32_0 = arith.constant 0 : i32
    return %c0_i32 : i32
  }
  func.func @transform_3(%arg0: i32, %arg1: i32) -> (i32, i32) {
    %c0_i32 = arith.constant 0 : i32
    return %arg0, %arg1 : i32, i32
  }
}

</mosaic_0001>

<bundles_post_ra>
// kernel: tpu_custom_call.1
= control target key start
LH: loop header
LB: loop body
LE: loop exit
PB: predicated region body
PF: predicated region fallthrough
CT: control target
= control target key end

     0   :  { %8 = vsyncpa [#allocation3], 0  ;;  %s260_s0 = inlined_call_operand.hbm [shape: f32[6,256], index: 0, kind: input, shape index: {}]   ;;  %s261_s1 = inlined_call_operand.vmem [shape: f32[3], index: 1, kind: input, shape index: {}]   ;;  %s262_s2 = inlined_call_operand.vmem [shape: f32[3], index: 2, kind: input, shape index: {}]   ;;  %s263_s3 = inlined_call_operand.hbm [shape: f32[6,256], index: 3, kind: output, shape index: {}]  }
   0x1   :  { %9 = vsyncpa [#allocation5], 0 }
   0x2   :  { %10 = vsyncpa [#allocation8], 0 }
   0x3   :  { %11 = vsyncpa [#allocation4], 0  ;;  %s28_s14 = sshll.u32 %s261_s1, 4  ;;  %s202_s15 = smov [#allocation2]   ;;  %s29_s14 = int_to_ptr.vmem [resolvable:$true] %s28_s14 }
   0x4   :  { %s18_s16 = sshll.u32 %s202_s15, 4  ;;  %s126_s19 = scalar_lea.hbm %s260_s0, 256  ;;  %s19_s16 = int_to_ptr.vmem [resolvable:$true] %s18_s16 }
   0x5   :  { %p127_p0 = scmp.ne.s32.totalorder %s260_s0, %s126_s19  ;;  %p130_p1 = scmp.lt.u32.totalorder %s126_s19, %s260_s0 }
   0x7   :  { %p132_p2 = pnand %p130_p1, %p127_p0 }
   0x9   :  { %135 = shalt.err (!%p132_p2)
}
   0xa   :  { %s136_s24 = scalar_lea.vmem %s19_s16, 256  ;;  %p141_p4 = scmp.lt.s32.totalorder %s19_s16, %s19_s16 }
   0xb   :  { %p137_p3 = scmp.ne.s32.totalorder %s19_s16, %s136_s24  ;;  %p142_p5 = scmp.lt.s32.totalorder %s136_s24, %s136_s24 }
   0xd   :  { %p143_p6 = por %p142_p5, %p141_p4 }
   0xf   :  { %p144_p7 = pnand %p143_p6, %p137_p3 }
  0x11   :  { %147 = shalt.err (!%p144_p7)
}
  0x12   :  { %21 = dma.hbm_to_vmem [thread:$0]  %s260_s0, 256, %s19_s16, [#allocation3]  }
  0x13   :  { %s148_s26 = scalar_lea.vmem %s29_s14, 16  ;;  %p153_p9 = scmp.lt.s32.totalorder %s29_s14, %s29_s14 }
  0x14   :  { %p149_p8 = scmp.ne.s32.totalorder %s29_s14, %s148_s26  ;;  %p154_p10 = scmp.lt.s32.totalorder %s148_s26, %s148_s26 }
  0x16   :  { %p155_p11 = por %p154_p10, %p153_p9 }
  0x18   :  { %p156_p12 = pnand %p155_p11, %p149_p8 }
  0x1a   :  { %159 = shalt.err (!%p156_p12)
}
  0x1b   :  { %s203_s27 = smov [#allocation6]   ;;  %s38_s30 = sshll.u32 %s262_s2, 4  ;;  %s39_s30 = int_to_ptr.vmem [resolvable:$true] %s38_s30 }
  0x1c   :  { %31 = dma.vmem_to_smem %s29_s14, 16, %s203_s27, [#allocation5]  }
  0x1d   :  { %s160_s4 = scalar_lea.vmem %s39_s30, 16  ;;  %p165_p0 = scmp.lt.s32.totalorder %s39_s30, %s39_s30 }
  0x1e   :  { %p161_p13 = scmp.ne.s32.totalorder %s39_s30, %s160_s4  ;;  %p166_p1 = scmp.lt.s32.totalorder %s160_s4, %s160_s4 }
  0x20   :  { %p167_p2 = por %p166_p1, %p165_p0 }
  0x22   :  { %p168_p3 = pnand %p167_p2, %p161_p13 }
  0x24   :  { %171 = shalt.err (!%p168_p3)
}
  0x25   :  { %s204_s0 = smov [#allocation7]  }
  0x26   :  { %41 = dma.vmem_to_smem %s39_s30, 16, %s204_s0, [#allocation8]  }
  0x27   :  { %194 = dma.done.wait [#allocation3], 256  }
  0x28   :  { %195 = vsyncadd [#allocation3], 4294967040 }
  0x29   :  { %196 = dma.done.wait [#allocation5], 16  }
  0x2a   :  { %197 = vsyncadd [#allocation5], 4294967280 }
  0x2b   :  { %198 = dma.done.wait [#allocation8], 16  }
  0x2c   :  { %199 = vsyncadd [#allocation8], 4294967280 }
  0x2d   :  { %51 = sfence }
  0x2e   :  { %v53_v0 = vlaneseq  ;;  %s73_s2 = sld [smem:[#allocation6]]  ;;  %s116_s6 = sld [smem:[#allocation6 + $0x1]]  ;;  %v91_v15 = vld [vmem:[#allocation2] sm:$0xff]  ;;  %v92_v16 = vld [vmem:[#allocation2 + $0x8] sm:$0xff] }
  0x2f   :  { %s75_s5 = sld [smem:[#allocation7]]  ;;  %s117_s7 = sld [smem:[#allocation7 + $0x1]] }
  0x30   :  { %v54_v1 = vshrl.u32 %v53_v0, 7  ;;  %s118_s8 = sld [smem:[#allocation6 + $0x2]]  ;;  %s205_s10 = smov [#allocation9]  }
  0x31   :  { %s119_s9 = sld [smem:[#allocation7 + $0x2]]  ;;  %s105_s11 = sshll.u32 %s205_s10, 4  ;;  %s106_s11 = int_to_ptr.vmem [resolvable:$true] %s105_s11 }
  0x32   :  { %v244_v2 = vmul.u32.u64.low 2863311531, %v54_v1  ;;  %v245_v3 = vmul.u32.u64.high 2863311531, %v54_v1, %v244_v2  ;;  %s172_s12 = scalar_lea.vmem %s106_s11, 256  ;;  %p177_p5 = scmp.lt.s32.totalorder %s106_s11, %s106_s11 }
  0x33   :  { %p173_p4 = scmp.ne.s32.totalorder %s106_s11, %s172_s12  ;;  %p178_p6 = scmp.lt.s32.totalorder %s172_s12, %s172_s12 }
  0x34   :  { %v63_v4 = vshrl.u32 %v245_v3, 1  ;;  %v74_v8 = vstv %s73_s2  ;;  %v79_v10 = vstv %s116_s6 }
  0x35   :  { %v76_v9 = vstv %s75_s5  ;;  %v82_v11 = vstv %s117_s7  ;;  %p179_p7 = por %p178_p6, %p177_p5 }
  0x36   :  { %v64_v5 = vmul.u32 3, %v63_v4  ;;  %v86_v13 = vstv %s118_s8 }
  0x37   :  { %v89_v14 = vstv %s119_s9  ;;  %p180_p8 = pnand %p179_p7, %p173_p4 }
  0x38   :  { %v65_v6 = vsub.s32 %v54_v1, %v64_v5 }
  0x3a   :  { %vm68_vm0 = vcmp.ne.s32.totalorder %v65_v6, 0  ;;  %vm69_vm1 = vcmp.lt.s32.totalorder %v65_v6, 0  ;;  %v71_v7 = vadd.s32 3, %v65_v6 }
  0x3b   :  { %vm70_vm2 = vmand %vm69_vm1, %vm68_vm0 }
  0x3c   :  { %v72_v12 = vsel %vm70_vm2, %v71_v7, %v65_v6 }
  0x3d   :  { %vm77_vm3 = vcmp.eq.s32.totalorder %v72_v12, 1  ;;  %vm84_vm4 = vcmp.eq.s32.totalorder %v72_v12, 2 }
  0x3e   :  { %v80_v17 = vsel %vm77_vm3, %v79_v10, %v74_v8  ;;  %v83_v18 = vsel %vm77_vm3, %v82_v11, %v76_v9 }
  0x3f   :  { %v87_v19 = vsel %vm84_vm4, %v86_v13, %v80_v17  ;;  %v90_v20 = vsel %vm84_vm4, %v89_v14, %v83_v18 }
  0x40   :  { %v93_v21 = vmul.f32 %v91_v15, %v87_v19  ;;  %v94_v22 = vmul.f32 %v92_v16, %v87_v19 }
  0x42   :  { %v95_v23 = vadd.f32 %v93_v21, %v90_v20  ;;  %v96_v24 = vadd.f32 %v94_v22, %v90_v20 }
  0x44   :  { %97 = vst [vmem:[#allocation9] sm:$0xff] %v95_v23  ;;  %98 = vst [vmem:[#allocation9 + $0x8] sm:$0xff] %v96_v24 }
  0x45   :  { %183 = shalt.err (!%p180_p8)
}
  0x46   :  { %s184_s15 = scalar_lea.hbm %s263_s3, 256 }
  0x47   :  { %p185_p9 = scmp.ne.s32.totalorder %s263_s3, %s184_s15  ;;  %p188_p10 = scmp.lt.u32.totalorder %s184_s15, %s263_s3 }
  0x49   :  { %p190_p11 = pnand %p188_p10, %p185_p9 }
  0x4b   :  { %193 = shalt.err (!%p190_p11)
}
  0x4c   :  { %108 = dma.vmem_to_hbm [thread:$0]  %s106_s11, 256, %s263_s3, [#allocation4]  }
  0x4d   :  { %200 = dma.done.wait [#allocation4], 256  }
  0x4e   :  { %201 = vsyncadd [#allocation4], 4294967040 }
  0x4f   :  { %112 = vsyncpa [#allocation3], 1 }
  0x50   :  { %113 = vsyncpa [#allocation4], 1 }
  0x51   :  { %114 = vsyncpa [#allocation5], 1 }
  0x52   :  { %115 = vsyncpa [#allocation8], 1 }

</bundles_post_ra>
